<compile_context>
chip_gen: v7x
topology: tpu7x:2x2x1
jax: 0.10.0
libtpu: 0.0.40
codegen_flags: <defaults>
</compile_context>

<pallas_src>
import functools

import jax
import jax.numpy as jnp
from jax.experimental import pallas as pl
from jax.experimental.pallas import tpu as pltpu


def _round_up(n, m):
    return ((n + m - 1) // m) * m


def nets_kernel(x_ref, w1_ref, b1_ref, w2_ref, b2_ref, w3_ref, b3_ref,
                rs_ref, o_ref):
    """fc1 -> leaky_relu -> fc2 -> leaky_relu -> fc3 -> tanh -> rescale."""
    # x arrives as f32 straight from HBM (no host-side pad/cast pass); cast the
    # MXU operand to bf16 in-register.  All matmuls accumulate in f32.
    x = x_ref[...].astype(jnp.bfloat16)
    h = jnp.dot(x, w1_ref[...], preferred_element_type=jnp.float32) + b1_ref[...]
    h = jnp.maximum(h, 0.01 * h)                       # leaky_relu(0.01)
    h = jnp.dot(h.astype(jnp.bfloat16), w2_ref[...],
                preferred_element_type=jnp.float32) + b2_ref[...]
    h = jnp.maximum(h, 0.01 * h)
    y = jnp.dot(h.astype(jnp.bfloat16), w3_ref[...],
                preferred_element_type=jnp.float32) + b3_ref[...]
    # tanh (EUP) + per-channel weight-normed rescale (f32).
    o_ref[...] = rs_ref[...] * jnp.tanh(y)


def _choose_batch_tile(B, block_b):
    """Batch tile: multiple of 8 (sublane rule), prefer >= 2 grid steps."""
    tb = _round_up(max(8, min(block_b, B)), 8)
    # Prefer at least 2 grid steps so dimension_semantics=("parallel",) can
    # shard the batch axis across v7x's two TensorCores.
    if _round_up(B, tb) == tb and B > 8:
        tb = _round_up((B + 1) // 2, 8)
    bp = _round_up(B, tb)
    return tb, bp


@functools.partial(jax.jit, static_argnames=("block_b",))
def nets_forward(x, w1, b1, w2, b2, w3, b3, rs_eff, *, block_b=512):
    B, F = x.shape
    H = w1.shape[1]
    TB, Bp = _choose_batch_tile(B, block_b)
    if Bp != B:
        # Zero rows are inert through the whole network and sliced off below.
        x = jnp.pad(x, ((0, Bp - B), (0, 0)))

    grid = (Bp // TB,)
    const = lambda i: (0, 0)       # weights/biases: VMEM-resident across steps
    batched = lambda i: (i, 0)     # x / out: tiled along the batch axis

    # Rough VMEM budget (bf16 weights + double-buffered x/out tiles + slack),
    # raised above v5e's 16 MiB default and clamped to v7x's 64 MiB physical.
    weight_bytes = 2 * (w1.size + w2.size + w3.size)
    act_bytes = 4 * TB * (2 * F + 2 * H)
    vmem_limit = int(min(64 * 1024 * 1024,
                         max(32 * 1024 * 1024,
                             4 * (weight_bytes + 2 * act_bytes))))

    # TODO(synk): once H reaches the low thousands, add a K-reduction grid axis
    # with an f32 VMEM accumulator (and single-buffer the weights) so bf16 w2
    # (2*H^2 bytes) still fits v7x's 64 MiB VMEM.
    out = pl.pallas_call(
        nets_kernel,
        out_shape=jax.ShapeDtypeStruct((Bp, F), jnp.float32),
        grid=grid,
        in_specs=[
            pl.BlockSpec((TB, F), batched),   # x   (f32, real feature dim)
            pl.BlockSpec((F, H), const),      # w1  (bf16, (in, out))
            pl.BlockSpec((1, H), const),      # b1
            pl.BlockSpec((H, H), const),      # w2
            pl.BlockSpec((1, H), const),      # b2
            pl.BlockSpec((H, F), const),      # w3
            pl.BlockSpec((1, F), const),      # b3
            pl.BlockSpec((1, F), const),      # rescale effective weight
        ],
        out_specs=pl.BlockSpec((TB, F), batched),
        compiler_params=pltpu.CompilerParams(
            dimension_semantics=("parallel",),
            vmem_limit_bytes=vmem_limit),
    )(x, w1, b1, w2, b2, w3, b3, rs_eff)

    return out if Bp == B else out[:B]


def init_params(key, num_features, length_hidden):
    """Deterministic synthetic params matching the PyTorch module's shapes."""
    F = num_features
    H = int(length_hidden * num_features)
    ks = jax.random.split(key, 8)
    # Linear weights stored as (in, out) = torch weight.T
    w1 = jax.random.normal(ks[0], (F, H), jnp.float32) * 0.1
    b1 = jax.random.normal(ks[1], (1, H), jnp.float32) * 0.1
    w2 = jax.random.normal(ks[2], (H, H), jnp.float32) * 0.1
    b2 = jax.random.normal(ks[3], (1, H), jnp.float32) * 0.1
    w3 = jax.random.normal(ks[4], (H, F), jnp.float32) * 0.1
    b3 = jax.random.normal(ks[5], (1, F), jnp.float32) * 0.1
    # weight_norm(Rescale): v is the (1, F) direction, g the (1, 1) magnitude.
    v = jax.random.normal(ks[6], (1, F), jnp.float32) + 1.0
    g = jax.random.normal(ks[7], (1, 1), jnp.float32) + 1.0
    return w1, b1, w2, b2, w3, b3, v, g


def prepare_params(w1, b1, w2, b2, w3, b3, v, g):
    """One-time prep (outside the per-call path).

    Folds weight_norm (PyTorch default dim=0 on a (1, F) parameter => scalar g,
    norm over the whole row: w = g * v / ||v||) and casts the MXU weights to
    bf16 once, so every forward call pays zero pad/cast passes over the params.
    """
    rs_eff = (g * v / jnp.sqrt(jnp.sum(v * v))).astype(jnp.float32)
    return (w1.astype(jnp.bfloat16), b1.astype(jnp.float32),
            w2.astype(jnp.bfloat16), b2.astype(jnp.float32),
            w3.astype(jnp.bfloat16), b3.astype(jnp.float32),
            rs_eff)


def reference_forward_bf16(x, w1, b1, w2, b2, w3, b3, rs_eff):
    """Pure-JAX reference with the same bf16-operand / f32-accumulate matmuls."""
    h = jnp.dot(x.astype(jnp.bfloat16), w1,
                preferred_element_type=jnp.float32) + b1
    h = jnp.maximum(h, 0.01 * h)
    h = jnp.dot(h.astype(jnp.bfloat16), w2,
                preferred_element_type=jnp.float32) + b2
    h = jnp.maximum(h, 0.01 * h)
    y = jnp.dot(h.astype(jnp.bfloat16), w3,
                preferred_element_type=jnp.float32) + b3
    return rs_eff * jnp.tanh(y)


def reference_forward_f32(x, w1, b1, w2, b2, w3, b3, v, g):
    """Full-precision reference of the original PyTorch forward."""
    rs_eff = g * v / jnp.sqrt(jnp.sum(v * v))
    h = x @ w1 + b1
    h = jnp.where(h > 0, h, 0.01 * h)
    h = h @ w2 + b2
    h = jnp.where(h > 0, h, 0.01 * h)
    y = h @ w3 + b3
    return rs_eff * jnp.tanh(y)


if __name__ == "__main__":
    B = 512          # batch: 2 MXU-aligned grid steps of 256 rows
    F = 16           # num_features
    LH = 4           # length_hidden -> hidden = 64

    key = jax.random.PRNGKey(0)
    kx, kp = jax.random.split(key)
    x = jax.random.normal(kx, (B, F), jnp.float32)
    raw = init_params(kp, F, LH)
    params = prepare_params(*raw)   # weight_norm fold + bf16 cast, once

    out = jax.block_until_ready(nets_forward(x, *params, block_b=256))

    ref_bf16 = reference_forward_bf16(x, *params)
    ref_f32 = reference_forward_f32(x, *raw)

    assert out.shape == (B, F)
    # Tight check vs. a reference using identical bf16-operand matmuls.
    assert jnp.allclose(out, ref_bf16, atol=2e-3, rtol=2e-3)
    # Looser check vs. the exact f32 forward of the original module.
    assert jnp.allclose(out, ref_f32, atol=3e-2, rtol=3e-2)
    print("KERNEL_OK")
</pallas_src>

<mosaic_0001>
module attributes {stable_mosaic.version = 11 : i64} {
  func.func @nets_kernel(%arg0: i32, %arg1: memref<256x16xf32, #tpu.memory_space<vmem>>, %arg2: memref<16x64xbf16, #tpu.memory_space<vmem>>, %arg3: memref<1x64xf32, #tpu.memory_space<vmem>>, %arg4: memref<64x64xbf16, #tpu.memory_space<vmem>>, %arg5: memref<1x64xf32, #tpu.memory_space<vmem>>, %arg6: memref<64x16xbf16, #tpu.memory_space<vmem>>, %arg7: memref<1x16xf32, #tpu.memory_space<vmem>>, %arg8: memref<1x16xf32, #tpu.memory_space<vmem>>, %arg9: memref<256x16xf32, #tpu.memory_space<vmem>>) attributes {dimension_semantics = [#tpu.dimension_semantics<parallel>], iteration_bounds = array<i64: 2>, scalar_prefetch = 0 : i64, scratch_operands = 0 : i64, tpu.core_type = #tpu.core_type<tc>, window_params = [{transform_indices = @transform_0, window_bounds = array<i64: 256, 16>}, {pipeline_mode = #tpu.pipeline_mode<synchronous>, transform_indices = @transform_1, window_bounds = array<i64: 16, 64>}, {pipeline_mode = #tpu.pipeline_mode<synchronous>, transform_indices = @transform_2, window_bounds = array<i64: 1, 64>}, {pipeline_mode = #tpu.pipeline_mode<synchronous>, transform_indices = @transform_3, window_bounds = array<i64: 64, 64>}, {pipeline_mode = #tpu.pipeline_mode<synchronous>, transform_indices = @transform_4, window_bounds = array<i64: 1, 64>}, {pipeline_mode = #tpu.pipeline_mode<synchronous>, transform_indices = @transform_5, window_bounds = array<i64: 64, 16>}, {pipeline_mode = #tpu.pipeline_mode<synchronous>, transform_indices = @transform_6, window_bounds = array<i64: 1, 16>}, {pipeline_mode = #tpu.pipeline_mode<synchronous>, transform_indices = @transform_7, window_bounds = array<i64: 1, 16>}, {transform_indices = @transform_8, window_bounds = array<i64: 256, 16>}]} {
    %c0 = arith.constant 0 : index
    %c0_0 = arith.constant 0 : index
    %0 = vector.load %arg1[%c0, %c0_0] : memref<256x16xf32, #tpu.memory_space<vmem>>, vector<256x16xf32>
    %1 = arith.truncf %0 : vector<256x16xf32> to vector<256x16xbf16>
    %c0_1 = arith.constant 0 : index
    %c0_2 = arith.constant 0 : index
    %2 = vector.load %arg2[%c0_1, %c0_2] : memref<16x64xbf16, #tpu.memory_space<vmem>>, vector<16x64xbf16>
    %cst = arith.constant dense<0.000000e+00> : vector<256x64xf32>
    %3 = tpu.matmul %1, %2, %cst {dimension_numbers = #tpu.dot_dimension_numbers<[1], [0], [0], [1], [0, 0, 1, 1], [], []>} : vector<256x16xbf16>, vector<16x64xbf16>, vector<256x64xf32> -> vector<256x64xf32>
    %c0_3 = arith.constant 0 : index
    %c0_4 = arith.constant 0 : index
    %4 = vector.load %arg3[%c0_3, %c0_4] : memref<1x64xf32, #tpu.memory_space<vmem>>, vector<1x64xf32>
    %5 = vector.broadcast %4 : vector<1x64xf32> to vector<256x64xf32>
    %6 = arith.addf %3, %5 : vector<256x64xf32>
    %cst_5 = arith.constant 0.00999999977 : f32
    %7 = vector.broadcast %cst_5 : f32 to vector<256x64xf32>
    %8 = arith.mulf %7, %6 : vector<256x64xf32>
    %9 = arith.maximumf %6, %8 : vector<256x64xf32>
    %10 = arith.truncf %9 : vector<256x64xf32> to vector<256x64xbf16>
    %c0_6 = arith.constant 0 : index
    %c0_7 = arith.constant 0 : index
    %11 = vector.load %arg4[%c0_6, %c0_7] : memref<64x64xbf16, #tpu.memory_space<vmem>>, vector<64x64xbf16>
    %cst_8 = arith.constant dense<0.000000e+00> : vector<256x64xf32>
    %12 = tpu.matmul %10, %11, %cst_8 {dimension_numbers = #tpu.dot_dimension_numbers<[1], [0], [0], [1], [0, 0, 1, 1], [], []>} : vector<256x64xbf16>, vector<64x64xbf16>, vector<256x64xf32> -> vector<256x64xf32>
    %c0_9 = arith.constant 0 : index
    %c0_10 = arith.constant 0 : index
    %13 = vector.load %arg5[%c0_9, %c0_10] : memref<1x64xf32, #tpu.memory_space<vmem>>, vector<1x64xf32>
    %14 = vector.broadcast %13 : vector<1x64xf32> to vector<256x64xf32>
    %15 = arith.addf %12, %14 : vector<256x64xf32>
    %cst_11 = arith.constant 0.00999999977 : f32
    %16 = vector.broadcast %cst_11 : f32 to vector<256x64xf32>
    %17 = arith.mulf %16, %15 : vector<256x64xf32>
    %18 = arith.maximumf %15, %17 : vector<256x64xf32>
    %19 = arith.truncf %18 : vector<256x64xf32> to vector<256x64xbf16>
    %c0_12 = arith.constant 0 : index
    %c0_13 = arith.constant 0 : index
    %20 = vector.load %arg6[%c0_12, %c0_13] : memref<64x16xbf16, #tpu.memory_space<vmem>>, vector<64x16xbf16>
    %cst_14 = arith.constant dense<0.000000e+00> : vector<256x16xf32>
    %21 = tpu.matmul %19, %20, %cst_14 {dimension_numbers = #tpu.dot_dimension_numbers<[1], [0], [0], [1], [0, 0, 1, 1], [], []>} : vector<256x64xbf16>, vector<64x16xbf16>, vector<256x16xf32> -> vector<256x16xf32>
    %c0_15 = arith.constant 0 : index
    %c0_16 = arith.constant 0 : index
    %22 = vector.load %arg7[%c0_15, %c0_16] : memref<1x16xf32, #tpu.memory_space<vmem>>, vector<1x16xf32>
    %23 = vector.broadcast %22 : vector<1x16xf32> to vector<256x16xf32>
    %24 = arith.addf %21, %23 : vector<256x16xf32>
    %c0_17 = arith.constant 0 : index
    %c0_18 = arith.constant 0 : index
    %25 = vector.load %arg8[%c0_17, %c0_18] : memref<1x16xf32, #tpu.memory_space<vmem>>, vector<1x16xf32>
    %26 = math.tanh %24 : vector<256x16xf32>
    %27 = vector.broadcast %25 : vector<1x16xf32> to vector<256x16xf32>
    %28 = arith.mulf %27, %26 : vector<256x16xf32>
    %c0_19 = arith.constant 0 : index
    %c0_20 = arith.constant 0 : index
    %29 = vector.load %arg9[%c0_19, %c0_20] : memref<256x16xf32, #tpu.memory_space<vmem>>, vector<256x16xf32>
    tpu.vector_store %arg9[%c0_19, %c0_20], %28 {strides = array<i32>} : memref<256x16xf32, #tpu.memory_space<vmem>>, vector<256x16xf32>,
    return
  }
  func.func @transform_0(%arg0: i32) -> (i32, i32) {
    %c0_i32 = arith.constant 0 : i32
    %c0_i32_0 = arith.constant 0 : i32
    return %arg0, %c0_i32 : i32, i32
  }
  func.func @transform_1(%arg0: i32) -> (i32, i32) {
    %c0_i32 = arith.constant 0 : i32
    %c0_i32_0 = arith.constant 0 : i32
    %c0_i32_1 = arith.constant 0 : i32
    return %c0_i32, %c0_i32_0 : i32, i32
  }
  func.func @transform_2(%arg0: i32) -> (i32, i32) {
    %c0_i32 = arith.constant 0 : i32
    %c0_i32_0 = arith.constant 0 : i32
    %c0_i32_1 = arith.constant 0 : i32
    return %c0_i32, %c0_i32_0 : i32, i32
  }
  func.func @transform_3(%arg0: i32) -> (i32, i32) {
    %c0_i32 = arith.constant 0 : i32
    %c0_i32_0 = arith.constant 0 : i32
    %c0_i32_1 = arith.constant 0 : i32
    return %c0_i32, %c0_i32_0 : i32, i32
  }
  func.func @transform_4(%arg0: i32) -> (i32, i32) {
    %c0_i32 = arith.constant 0 : i32
    %c0_i32_0 = arith.constant 0 : i32
    %c0_i32_1 = arith.constant 0 : i32
    return %c0_i32, %c0_i32_0 : i32, i32
  }
  func.func @transform_5(%arg0: i32) -> (i32, i32) {
    %c0_i32 = arith.constant 0 : i32
    %c0_i32_0 = arith.constant 0 : i32
    %c0_i32_1 = arith.constant 0 : i32
    return %c0_i32, %c0_i32_0 : i32, i32
  }
  func.func @transform_6(%arg0: i32) -> (i32, i32) {
    %c0_i32 = arith.constant 0 : i32
    %c0_i32_0 = arith.constant 0 : i32
    %c0_i32_1 = arith.constant 0 : i32
    return %c0_i32, %c0_i32_0 : i32, i32
  }
  func.func @transform_7(%arg0: i32) -> (i32, i32) {
    %c0_i32 = arith.constant 0 : i32
    %c0_i32_0 = arith.constant 0 : i32
    %c0_i32_1 = arith.constant 0 : i32
    return %c0_i32, %c0_i32_0 : i32, i32
  }
  func.func @transform_8(%arg0: i32) -> (i32, i32) {
    %c0_i32 = arith.constant 0 : i32
    %c0_i32_0 = arith.constant 0 : i32
    return %arg0, %c0_i32 : i32, i32
  }
}

</mosaic_0001>

<bundles_post_ra>
// kernel: nets_forward.1
= control target key start
LH: loop header
LB: loop body
LE: loop exit
PB: predicated region body
PF: predicated region fallthrough
CT: control target
= control target key end

     0   :  { %s1778_s27 = smov 0   ;;  %s2134_s0 = inlined_call_operand.vmem [shape: f32[512,16], index: 0, kind: input, shape index: {}]   ;;  %s2135_s1 = inlined_call_operand.vmem [shape: bf16[16,64], index: 1, kind: input, shape index: {}]   ;;  %s2136_s2 = inlined_call_operand.vmem [shape: f32[1,64], index: 2, kind: input, shape index: {}]   ;;  %s2137_s3 = inlined_call_operand.vmem [shape: bf16[64,64], index: 3, kind: input, shape index: {}]   ;;  %s2138_s4 = inlined_call_operand.vmem [shape: f32[1,64], index: 4, kind: input, shape index: {}]   ;;  %s2139_s5 = inlined_call_operand.vmem [shape: bf16[64,16], index: 5, kind: input, shape index: {}]   ;;  %s2140_s6 = inlined_call_operand.vmem [shape: f32[1,16], index: 6, kind: input, shape index: {}]   ;;  %s2141_s7 = inlined_call_operand.vmem [shape: f32[1,16], index: 7, kind: input, shape index: {}]   ;;  %s2142_s8 = inlined_call_operand.vmem [shape: f32[512,16], index: 8, kind: output, shape index: {}]  }
   0x1 LB: > { %s1399_s28 = sadd.s32 4294967295, %s1731_s27   ;;  %p1403_p0 = scmp.ge.s32.totalorder %s1731_s27, 1  ;;  %s1731_s27 = sphi %s1778_s27, %s18_s27  }
   0x2   : > { %p263_p1 = scmp.lt.s32.totalorder %s1731_s27, 3 }
   0x4   : > { %p264_p2 = pnand %p1403_p0, %p263_p1 }
   0x5   : > { %v1652_v0 = vld [vmem:[%s2135_s1] sm:$0xff] (!%p264_p2)   ;;  %s1404_s9 = sshll.u32 (!%p264_p2), %s1399_s28, 5  ;;  %vm373_vm0 = vcmask (!%p264_p2), 130048   ;;  %v1654_v23 = vld [vmem:[%s2137_s3 + $0x8] sm:$0xff] (!%p264_p2)   ;;  %v1655_v28 = vld [vmem:[%s2137_s3 + $0x10] sm:$0xff] (!%p264_p2)   ;;  %vm702_vm1 = vcmask (!%p264_p2), 523264  }
   0x6   : > { %267 = sbr.rel (%p264_p2) target bundleno = 755 (0x2f3), region = 52  ;;  %p298_p3 = scmp.lt.s32.totalorder (!%p264_p2), %s1404_s9, 63  ;;  %1528 = vmatprep.subr.bf16.mxu0 (!%p264_p2), %v1652_v0  ;;  %1642 = vmatprep.subr.bf16.mxu1 (!%p264_p2), %v1652_v0  ;;  %v1653_v1 = vld [vmem:[%s2137_s3] sm:$0xff] (!%p264_p2)   ;;  %v1656_v52 = vld [vmem:[%s2137_s3 + $0x18] sm:$0xff] (!%p264_p2)   ;;  %v1658_v54 = vld [vmem:[%s2139_s5 + $0x8] sm:$0xff] (!%p264_p2)  }
   0x7   : > { %1529 = vmatpush3.bf16.msra.mxu0 (!%p264_p2), %v1652_v0  ;;  %1643 = vmatpush3.bf16.msra.mxu1 (!%p264_p2), %v1652_v0  ;;  %v1657_v53 = vld [vmem:[%s2139_s5] sm:$0xff] (!%p264_p2)   ;;  %v1659_v55 = vld [vmem:[%s2139_s5 + $0x10] sm:$0xff] (!%p264_p2)  }
   0x8   : > { %1562 = vmatprep.subr.bf16.mxu1 (!%p264_p2), %v1653_v1  ;;  %1602 = vmatprep.subr.bf16.mxu0 (!%p264_p2), %v1657_v53  ;;  %v1871_v56 = vld [vmem:[%s2136_s2] ss:$0 sm:$0xff] (!%p264_p2) }
   0xd   : > { %s2144_s9 = smov (!%p298_p3, %s1404_s9), 63 }
   0xe   : > { %s1405_s12 = sshll.u32 %s2144_s9, 3 }
   0xf   : > { %s1800_s15 = scalar_lea.vmem %s2134_s0, %s1405_s12  ;;  %s2009_s21 = scalar_lea.vmem %s2142_s8, %s1405_s12 }
  0x10   : > { %v310_v2 = vld [vmem:[%s1800_s15] sm:$0xff]  ;;  %v311_v3 = vld [vmem:[%s1800_s15 + $0x8] sm:$0xff]  ;;  %v312_v4 = vld [vmem:[%s1800_s15 + $0x10] sm:$0xff] }
  0x11   : > { %v342_v5 = vpack.c.bf16 %v311_v3, %v310_v2  ;;  %v313_v6 = vld [vmem:[%s1800_s15 + $0x18] sm:$0xff]  ;;  %v314_v7 = vld [vmem:[%s1800_s15 + $0x20] sm:$0xff]  ;;  %v315_v8 = vld [vmem:[%s1800_s15 + $0x28] sm:$0xff] }
  0x12   : > { %v343_v9 = vpack.c.bf16 %v313_v6, %v312_v4  ;;  %v344_v10 = vpack.c.bf16 %v315_v8, %v314_v7  ;;  %v316_v11 = vld [vmem:[%s1800_s15 + $0x30] sm:$0xff]  ;;  %v317_v12 = vld [vmem:[%s1800_s15 + $0x38] sm:$0xff]  ;;  %v318_v13 = vld [vmem:[%s1800_s15 + $0x40] sm:$0xff] }
  0x13   : > { %1530 = vmatprep.mubr.msk.bf16.mxu0 %vm373_vm0, %v342_v5  ;;  %v319_v14 = vld [vmem:[%s1800_s15 + $0x48] sm:$0xff]  ;;  %v326_v15 = vld [vmem:[%s1800_s15 + $0x80] sm:$0xff]  ;;  %v328_v18 = vld [vmem:[%s1800_s15 + $0x90] sm:$0xff]  ;;  %v345_v24 = vpack.c.bf16 %v317_v12, %v316_v11 }
  0x14   : > { %1531 = vmatmul.mubr.msk.bf16.vlgmr.msra.gmra.mrb[0].mxu0 %vm373_vm0, %v343_v9  ;;  %v327_v16 = vld [vmem:[%s1800_s15 + $0x88] sm:$0xff]  ;;  %v329_v19 = vld [vmem:[%s1800_s15 + $0x98] sm:$0xff]  ;;  %v330_v20 = vld [vmem:[%s1800_s15 + $0xa0] sm:$0xff]  ;;  %v346_v26 = vpack.c.bf16 %v319_v14, %v318_v13 }
  0x15   : > { %1534 = vmatprep.mubr.msk.bf16.mxu0 %vm373_vm0, %v344_v10  ;;  %v350_v17 = vpack.c.bf16 %v327_v16, %v326_v15  ;;  %v351_v21 = vpack.c.bf16 %v329_v19, %v328_v18  ;;  %v331_v22 = vld [vmem:[%s1800_s15 + $0xa8] sm:$0xff]  ;;  %v332_v27 = vld [vmem:[%s1800_s15 + $0xb0] sm:$0xff]  ;;  %v333_v29 = vld [vmem:[%s1800_s15 + $0xb8] sm:$0xff]  ;;  %1603 = vmatpush3.bf16.msra.mxu0 %v1657_v53 }
  0x16   : > { %v352_v25 = vpack.c.bf16 %v331_v22, %v330_v20  ;;  %v334_v30 = vld [vmem:[%s1800_s15 + $0xc0] sm:$0xff]  ;;  %v335_v31 = vld [vmem:[%s1800_s15 + $0xc8] sm:$0xff]  ;;  %v320_v32 = vld [vmem:[%s1800_s15 + $0x50] sm:$0xff]  ;;  %v353_v34 = vpack.c.bf16 %v333_v29, %v332_v27  ;;  %1604 = vmatprep.subr.bf16.mxu0 %v1658_v54 }
  0x17   : > { %1546 = vmatprep.mubr.msk.bf16.mxu1 %vm373_vm0, %v350_v17  ;;  %v321_v33 = vld [vmem:[%s1800_s15 + $0x58] sm:$0xff]  ;;  %v322_v35 = vld [vmem:[%s1800_s15 + $0x60] sm:$0xff]  ;;  %v323_v36 = vld [vmem:[%s1800_s15 + $0x68] sm:$0xff]  ;;  %v354_v37 = vpack.c.bf16 %v335_v31, %v334_v30 }
  0x18   : > { %1547 = vmatmul.mubr.msk.bf16.vlgmr.msra.gmra.mrb[0].mxu1 %vm373_vm0, %v351_v21  ;;  %v347_v38 = vpack.c.bf16 %v321_v33, %v320_v32  ;;  %v348_v39 = vpack.c.bf16 %v323_v36, %v322_v35  ;;  %v336_v40 = vld [vmem:[%s1800_s15 + $0xd0] sm:$0xff]  ;;  %v337_v41 = vld [vmem:[%s1800_s15 + $0xd8] sm:$0xff]  ;;  %v338_v42 = vld [vmem:[%s1800_s15 + $0xe0] sm:$0xff] }
  0x19   : > { %1550 = vmatprep.mubr.msk.bf16.mxu1 %vm373_vm0, %v352_v25  ;;  %1563 = vmatpush3.bf16.msra.mxu1 %v1653_v1  ;;  %v339_v43 = vld [vmem:[%s1800_s15 + $0xe8] sm:$0xff]  ;;  %v324_v44 = vld [vmem:[%s1800_s15 + $0x70] sm:$0xff]  ;;  %v325_v45 = vld [vmem:[%s1800_s15 + $0x78] sm:$0xff]  ;;  %v355_v46 = vpack.c.bf16 %v337_v41, %v336_v40 }
  0x1a   : > { %1564 = vmatprep.subr.bf16.mxu1 %v1654_v23  ;;  %v356_v47 = vpack.c.bf16 %v339_v43, %v338_v42  ;;  %v349_v48 = vpack.c.bf16 %v325_v45, %v324_v44  ;;  %v340_v49 = vld [vmem:[%s1800_s15 + $0xf0] sm:$0xff]  ;;  %v341_v50 = vld [vmem:[%s1800_s15 + $0xf8] sm:$0xff]  ;;  %1605 = vmatpush3.bf16.msra.mxu0 %v1658_v54 }
  0x1b   : > { %v357_v51 = vpack.c.bf16 %v341_v50, %v340_v49  ;;  %1606 = vmatprep.subr.bf16.mxu0 %v1659_v55 }
  0x1c   : > { %1535 = vmatmul.mubr.msk.bf16.gmra.mrb[4].mxu0 %vm373_vm0, %v345_v24 }
  0x1d   : > { %1538 = vmatprep.mubr.msk.bf16.mxu0 %vm373_vm0, %v346_v26  ;;  %1565 = vmatpush3.bf16.msra.mxu1 %v1654_v23 }
  0x1e   : > { %1566 = vmatprep.subr.bf16.mxu1 %v1655_v28  ;;  %1607 = vmatpush3.bf16.msra.mxu0 %v1659_v55 }
  0x20   : > { %1551 = vmatmul.mubr.msk.bf16.gmra.mrb[4].mxu1 %vm373_vm0, %v353_v34 }
  0x21   : > { %1554 = vmatprep.mubr.msk.bf16.mxu1 %vm373_vm0, %v354_v37  ;;  %1567 = vmatpush3.bf16.msra.mxu1 %v1655_v28 }
  0x22   : > { %1568 = vmatprep.subr.bf16.mxu1 %v1656_v52 }
  0x24   : > { %1539 = vmatmul.mubr.msk.bf16.gmra.mrb[8].mxu0 %vm373_vm0, %v347_v38 }
  0x25   : > { %1542 = vmatprep.mubr.msk.bf16.mxu0 %vm373_vm0, %v348_v39  ;;  %1569 = vmatpush3.bf16.msra.mxu1 %v1656_v52 }
  0x28   : > { %1555 = vmatmul.mubr.msk.bf16.gmra.mrb[8].mxu1 %vm373_vm0, %v355_v46 }
  0x29   : > { %1558 = vmatprep.mubr.msk.bf16.mxu1 %vm373_vm0, %v356_v47 }
  0x2c   : > { %1543 = vmatmul.mubr.msk.bf16.gmra.mrb[12].mxu0 %vm373_vm0, %v349_v48 }
  0x30   : > { %1559 = vmatmul.mubr.msk.bf16.gmra.mrb[12].mxu1 %vm373_vm0, %v357_v51 }
  0xe7   : > { %v1532_v57 = vpop.f32.mrb[0].mxu0 }
  0xe8   : > { %v465_v58 = vadd.f32 %v1532_v57, %v1871_v56  ;;  %v456_v59 = vpop.f32.mrb[1].mxu0 }
  0xe9   : > { %v457_v60 = vadd.f32 %v1871_v56, %v456_v59  ;;  %v1533_v61 = vpop.f32.mrb[2].mxu0 }
  0xea   : > { %v585_v62 = vmul.f32 0.01, %v465_v58  ;;  %v468_v63 = vadd.f32 %v1533_v61, %v1871_v56  ;;  %v459_v0 = vpop.f32.mrb[3].mxu0 }
  0xeb   : > { %v583_v1 = vmul.f32 0.01, %v457_v60  ;;  %v460_v2 = vadd.f32 %v1871_v56, %v459_v0  ;;  %v1548_v4 = vpop.f32.mrb[0].mxu1 }
  0xec   : > { %v586_v3 = vmul.f32 0.01, %v468_v63  ;;  %v529_v6 = vadd.f32 %v1548_v4, %v1871_v56  ;;  %v520_v7 = vpop.f32.mrb[1].mxu1  ;;  %v617_v8 = vmax.f32 %v465_v58, %v585_v62 }
  0xed   : > { %v584_v5 = vmul.f32 0.01, %v460_v2  ;;  %v521_v10 = vadd.f32 %v1871_v56, %v520_v7  ;;  %v1549_v11 = vpop.f32.mrb[2].mxu1  ;;  %v615_v12 = vmax.f32 %v457_v60, %v583_v1 }
  0xee   : > { %v618_v9 = vmax.f32 %v468_v63, %v586_v3  ;;  %v601_v15 = vmul.f32 0.01, %v529_v6  ;;  %v532_v16 = vadd.f32 %v1549_v11, %v1871_v56  ;;  %v523_v17 = vpop.f32.mrb[3].mxu1 }
  0xef   : > { %v616_v13 = vmax.f32 %v460_v2, %v584_v5  ;;  %v1536_v14 = vpop.f32.mrb[4].mxu0  ;;  %v599_v21 = vmul.f32 0.01, %v521_v10  ;;  %v524_v22 = vadd.f32 %v1871_v56, %v523_v17 }
  0xf0   : > { %v648_v18 = vpack.c.bf16 %v618_v9, %v617_v8  ;;  %v481_v19 = vadd.f32 %v1536_v14, %v1871_v56  ;;  %v472_v20 = vpop.f32.mrb[5].mxu0  ;;  %v633_v26 = vmax.f32 %v529_v6, %v601_v15  ;;  %v602_v27 = vmul.f32 0.01, %v532_v16 }
  0xf1   : > { %v647_v23 = vpack.c.bf16 %v616_v13, %v615_v12  ;;  %v473_v24 = vadd.f32 %v1871_v56, %v472_v20  ;;  %v1537_v25 = vpop.f32.mrb[6].mxu0  ;;  %v631_v31 = vmax.f32 %v521_v10, %v599_v21  ;;  %v600_v32 = vmul.f32 0.01, %v524_v22 }
  0xf2   : > { %v589_v28 = vmul.f32 0.01, %v481_v19  ;;  %v484_v29 = vadd.f32 %v1537_v25, %v1871_v56  ;;  %v475_v30 = vpop.f32.mrb[7].mxu0  ;;  %v634_v35 = vmax.f32 %v532_v16, %v602_v27 }
  0xf3   : > { %v587_v33 = vmul.f32 0.01, %v473_v24  ;;  %v476_v34 = vadd.f32 %v1871_v56, %v475_v30  ;;  %1570 = vmatprep.mubr.msk.bf16.mxu1 %vm702_vm1, %v647_v23  ;;  %v632_v37 = vmax.f32 %v524_v22, %v600_v32  ;;  %v1552_v38 = vpop.f32.mrb[4].mxu1 }
  0xf4   : > { %v590_v36 = vmul.f32 0.01, %v484_v29  ;;  %1571 = vmatmul.mubr.msk.bf16.vlgmr.msra.gmra.mrb[16].mxu1 %vm702_vm1, %v648_v18  ;;  %v1887_v40 = vpack.c.bf16 %v634_v35, %v633_v26  ;;  %v545_v41 = vadd.f32 %v1552_v38, %v1871_v56  ;;  %v536_v42 = vpop.f32.mrb[5].mxu1  ;;  %v621_v43 = vmax.f32 %v481_v19, %v589_v28 }
  0xf5   : > { %v588_v39 = vmul.f32 0.01, %v476_v34  ;;  %v1890_v45 = vpack.c.bf16 %v632_v37, %v631_v31  ;;  %v537_v46 = vadd.f32 %v1871_v56, %v536_v42  ;;  %v1553_v47 = vpop.f32.mrb[6].mxu1  ;;  %v619_v48 = vmax.f32 %v473_v24, %v587_v33 }
  0xf6   : > { %v622_v44 = vmax.f32 %v484_v29, %v590_v36  ;;  %v605_v51 = vmul.f32 0.01, %v545_v41  ;;  %v548_v52 = vadd.f32 %v1553_v47, %v1871_v56  ;;  %v539_v53 = vpop.f32.mrb[7].mxu1 }
  0xf7   : > { %v620_v49 = vmax.f32 %v476_v34, %v588_v39  ;;  %v1540_v50 = vpop.f32.mrb[8].mxu0  ;;  %v603_v58 = vmul.f32 0.01, %v537_v46  ;;  %v540_v59 = vadd.f32 %v1871_v56, %v539_v53 }
  0xf8   : > { %v650_v54 = vpack.c.bf16 %v622_v44, %v621_v43  ;;  %v497_v55 = vadd.f32 %v1540_v50, %v1871_v56  ;;  %v488_v57 = vpop.f32.mrb[9].mxu0  ;;  %v637_v63 = vmax.f32 %v545_v41, %v605_v51  ;;  %v606_v0 = vmul.f32 0.01, %v548_v52 }
  0xf9   : > { %v649_v60 = vpack.c.bf16 %v620_v49, %v619_v48  ;;  %v489_v61 = vadd.f32 %v1871_v56, %v488_v57  ;;  %v1541_v62 = vpop.f32.mrb[10].mxu0  ;;  %v635_v4 = vmax.f32 %v537_v46, %v603_v58  ;;  %v604_v5 = vmul.f32 0.01, %v540_v59 }
  0xfa   : > { %v593_v1 = vmul.f32 0.01, %v497_v55  ;;  %v500_v2 = vadd.f32 %v1541_v62, %v1871_v56  ;;  %v491_v3 = vpop.f32.mrb[11].mxu0  ;;  %v638_v8 = vmax.f32 %v548_v52, %v606_v0 }
  0xfb   : > { %v591_v6 = vmul.f32 0.01, %v489_v61  ;;  %v492_v7 = vadd.f32 %v1871_v56, %v491_v3  ;;  %1574 = vmatprep.mubr.msk.bf16.mxu1 %vm702_vm1, %v649_v60  ;;  %v636_v10 = vmax.f32 %v540_v59, %v604_v5  ;;  %v1556_v11 = vpop.f32.mrb[8].mxu1 }
  0xfc   : > { %v594_v9 = vmul.f32 0.01, %v500_v2  ;;  %1575 = vmatmul.mubr.msk.bf16.gmra.mrb[20].mxu1 %vm702_vm1, %v650_v54  ;;  %v1901_v13 = vpack.c.bf16 %v638_v8, %v637_v63  ;;  %v561_v14 = vadd.f32 %v1556_v11, %v1871_v56  ;;  %v552_v15 = vpop.f32.mrb[9].mxu1  ;;  %v625_v16 = vmax.f32 %v497_v55, %v593_v1 }
  0xfd   : > { %v592_v12 = vmul.f32 0.01, %v492_v7  ;;  %v657_v18 = vpack.c.bf16 %v636_v10, %v635_v4  ;;  %v553_v19 = vadd.f32 %v1871_v56, %v552_v15  ;;  %v1557_v20 = vpop.f32.mrb[10].mxu1  ;;  %v623_v21 = vmax.f32 %v489_v61, %v591_v6 }
  0xfe   : > { %v626_v17 = vmax.f32 %v500_v2, %v594_v9  ;;  %v609_v24 = vmul.f32 0.01, %v561_v14  ;;  %v564_v25 = vadd.f32 %v1557_v20, %v1871_v56  ;;  %v555_v26 = vpop.f32.mrb[11].mxu1 }
  0xff   : > { %v624_v22 = vmax.f32 %v492_v7, %v592_v12  ;;  %v1544_v23 = vpop.f32.mrb[12].mxu0  ;;  %v607_v30 = vmul.f32 0.01, %v553_v19  ;;  %v556_v31 = vadd.f32 %v1871_v56, %v555_v26 }
 0x100   : > { %v652_v27 = vpack.c.bf16 %v626_v17, %v625_v16  ;;  %v513_v28 = vadd.f32 %v1544_v23, %v1871_v56  ;;  %v504_v29 = vpop.f32.mrb[13].mxu0  ;;  %v641_v35 = vmax.f32 %v561_v14, %v609_v24  ;;  %v610_v36 = vmul.f32 0.01, %v564_v25 }
 0x101   : > { %v651_v32 = vpack.c.bf16 %v624_v22, %v623_v21  ;;  %v505_v33 = vadd.f32 %v1871_v56, %v504_v29  ;;  %v1545_v34 = vpop.f32.mrb[14].mxu0  ;;  %v639_v41 = vmax.f32 %v553_v19, %v607_v30  ;;  %v608_v42 = vmul.f32 0.01, %v556_v31 }
 0x102   : > { %v597_v37 = vmul.f32 0.01, %v513_v28  ;;  %v516_v38 = vadd.f32 %v1545_v34, %v1871_v56  ;;  %v507_v39 = vpop.f32.mrb[15].mxu0  ;;  %v642_v46 = vmax.f32 %v564_v25, %v610_v36 }
 0x103   : > { %v595_v43 = vmul.f32 0.01, %v505_v33  ;;  %v508_v44 = vadd.f32 %v1871_v56, %v507_v39  ;;  %1578 = vmatprep.mubr.msk.bf16.mxu1 %vm702_vm1, %v651_v32  ;;  %v640_v48 = vmax.f32 %v556_v31, %v608_v42  ;;  %v1560_v49 = vpop.f32.mrb[12].mxu1 }
 0x104   : > { %v598_v47 = vmul.f32 0.01, %v516_v38  ;;  %1579 = vmatmul.mubr.msk.bf16.gmra.mrb[24].mxu1 %vm702_vm1, %v652_v27  ;;  %v660_v51 = vpack.c.bf16 %v642_v46, %v641_v35  ;;  %v577_v52 = vadd.f32 %v1560_v49, %v1871_v56  ;;  %v568_v53 = vpop.f32.mrb[13].mxu1  ;;  %v629_v54 = vmax.f32 %v513_v28, %v597_v37 }
 0x105   : > { %v596_v50 = vmul.f32 0.01, %v508_v44  ;;  %v659_v57 = vpack.c.bf16 %v640_v48, %v639_v41  ;;  %v569_v58 = vadd.f32 %v1871_v56, %v568_v53  ;;  %v1561_v59 = vpop.f32.mrb[14].mxu1  ;;  %v627_v60 = vmax.f32 %v505_v33, %v595_v43 }
 0x106   : > { %v630_v55 = vmax.f32 %v516_v38, %v598_v47  ;;  %v613_v62 = vmul.f32 0.01, %v577_v52  ;;  %v580_v63 = vadd.f32 %v1561_v59, %v1871_v56  ;;  %v571_v0 = vpop.f32.mrb[15].mxu1 }
 0x107   : > { %v628_v61 = vmax.f32 %v508_v44, %v596_v50  ;;  %v611_v2 = vmul.f32 0.01, %v569_v58  ;;  %v572_v3 = vadd.f32 %v1871_v56, %v571_v0  ;;  %v1660_v56 = vld [vmem:[%s2139_s5 + $0x18] sm:$0xff]  }
 0x108   : > { %v654_v1 = vpack.c.bf16 %v630_v55, %v629_v54  ;;  %v645_v5 = vmax.f32 %v577_v52, %v613_v62  ;;  %v614_v6 = vmul.f32 0.01, %v580_v63  ;;  %1608 = vmatprep.subr.bf16.mxu0 %v1660_v56 }
 0x109   : > { %v653_v4 = vpack.c.bf16 %v628_v61, %v627_v60  ;;  %v643_v7 = vmax.f32 %v569_v58, %v611_v2  ;;  %v612_v8 = vmul.f32 0.01, %v572_v3  ;;  %1609 = vmatpush3.bf16.msra.mxu0 %v1660_v56 }
 0x10a   : > { %v646_v9 = vmax.f32 %v580_v63, %v614_v6 }
 0x10b   : > { %1582 = vmatprep.mubr.msk.bf16.mxu1 %vm702_vm1, %v653_v4  ;;  %v644_v10 = vmax.f32 %v572_v3, %v612_v8 }
 0x10c   : > { %1583 = vmatmul.mubr.msk.bf16.gmra.mrb[28].mxu1 %vm702_vm1, %v654_v1  ;;  %v662_v11 = vpack.c.bf16 %v646_v9, %v645_v5 }
 0x10d   : > { %1586 = vmatprep.mubr.msk.bf16.mxu1 %vm702_vm1, %v1890_v45  ;;  %v661_v12 = vpack.c.bf16 %v644_v10, %v643_v7 }
 0x114   : > { %1587 = vmatmul.mubr.msk.bf16.gmra.mrb[32].mxu1 %vm702_vm1, %v1887_v40  ;;  %v1936_v40 = vld [vmem:[%s2138_s4] ss:$0 sm:$0xff] }
 0x115   : > { %1590 = vmatprep.mubr.msk.bf16.mxu1 %vm702_vm1, %v657_v18 }
 0x11c   : > { %1591 = vmatmul.mubr.msk.bf16.gmra.mrb[36].mxu1 %vm702_vm1, %v1901_v13 }
 0x11d   : > { %1594 = vmatprep.mubr.msk.bf16.mxu1 %vm702_vm1, %v659_v57 }
 0x124   : > { %1595 = vmatmul.mubr.msk.bf16.gmra.mrb[40].mxu1 %vm702_vm1, %v660_v51 }
 0x125   : > { %1598 = vmatprep.mubr.msk.bf16.mxu1 %vm702_vm1, %v661_v12 }
 0x12c   : > { %1599 = vmatmul.mubr.msk.bf16.gmra.mrb[44].mxu1 %vm702_vm1, %v662_v11 }
 0x1c7   : > { %v1572_v45 = vpop.f32.mrb[16].mxu1 }
 0x1c8   : > { %v794_v13 = vadd.f32 %v1572_v45, %v1936_v40  ;;  %v785_v14 = vpop.f32.mrb[17].mxu1 }
 0x1c9   : > { %v786_v15 = vadd.f32 %v1936_v40, %v785_v14  ;;  %v1573_v16 = vpop.f32.mrb[18].mxu1 }
 0x1ca   : > { %v914_v17 = vmul.f32 0.01, %v794_v13  ;;  %v797_v18 = vadd.f32 %v1573_v16, %v1936_v40  ;;  %v788_v19 = vpop.f32.mrb[19].mxu1 }
 0x1cb   : > { %v912_v20 = vmul.f32 0.01, %v786_v15  ;;  %v789_v21 = vadd.f32 %v1936_v40, %v788_v19 }
 0x1cc   : > { %v915_v22 = vmul.f32 0.01, %v797_v18  ;;  %v946_v24 = vmax.f32 %v794_v13, %v914_v17 }
 0x1cd   : > { %v913_v23 = vmul.f32 0.01, %v789_v21  ;;  %v944_v26 = vmax.f32 %v786_v15, %v912_v20 }
 0x1ce   : > { %v947_v25 = vmax.f32 %v797_v18, %v915_v22 }
 0x1cf   : > { %v945_v27 = vmax.f32 %v789_v21, %v913_v23  ;;  %v1576_v28 = vpop.f32.mrb[20].mxu1 }
 0x1d0   : > { %v977_v29 = vpack.c.bf16 %v947_v25, %v946_v24  ;;  %v810_v30 = vadd.f32 %v1576_v28, %v1936_v40  ;;  %v801_v31 = vpop.f32.mrb[21].mxu1 }
 0x1d1   : > { %v976_v32 = vpack.c.bf16 %v945_v27, %v944_v26  ;;  %v802_v33 = vadd.f32 %v1936_v40, %v801_v31  ;;  %v1577_v34 = vpop.f32.mrb[22].mxu1 }
 0x1d2   : > { %v918_v35 = vmul.f32 0.01, %v810_v30  ;;  %v813_v36 = vadd.f32 %v1577_v34, %v1936_v40  ;;  %v804_v37 = vpop.f32.mrb[23].mxu1 }
 0x1d3   : > { %v916_v38 = vmul.f32 0.01, %v802_v33  ;;  %v805_v39 = vadd.f32 %v1936_v40, %v804_v37  ;;  %1610 = vmatprep.mubr.msk.bf16.mxu0 %vm702_vm1, %v976_v32 }
 0x1d4   : > { %v919_v41 = vmul.f32 0.01, %v813_v36  ;;  %1611 = vmatmul.mubr.msk.bf16.vlgmr.msra.gmra.mrb[16].mxu0 %vm702_vm1, %v977_v29  ;;  %v950_v43 = vmax.f32 %v810_v30, %v918_v35 }
 0x1d5   : > { %v917_v42 = vmul.f32 0.01, %v805_v39  ;;  %v948_v46 = vmax.f32 %v802_v33, %v916_v38 }
 0x1d6   : > { %v951_v44 = vmax.f32 %v813_v36, %v919_v41 }
 0x1d7   : > { %v949_v47 = vmax.f32 %v805_v39, %v917_v42  ;;  %v1580_v48 = vpop.f32.mrb[24].mxu1 }
 0x1d8   : > { %v979_v49 = vpack.c.bf16 %v951_v44, %v950_v43  ;;  %v826_v50 = vadd.f32 %v1580_v48, %v1936_v40  ;;  %v817_v51 = vpop.f32.mrb[25].mxu1 }
 0x1d9   : > { %v978_v52 = vpack.c.bf16 %v949_v47, %v948_v46  ;;  %v818_v53 = vadd.f32 %v1936_v40, %v817_v51  ;;  %v1581_v54 = vpop.f32.mrb[26].mxu1 }
 0x1da   : > { %v922_v55 = vmul.f32 0.01, %v826_v50  ;;  %v829_v57 = vadd.f32 %v1581_v54, %v1936_v40  ;;  %v820_v58 = vpop.f32.mrb[27].mxu1 }
 0x1db   : > { %v920_v59 = vmul.f32 0.01, %v818_v53  ;;  %v821_v60 = vadd.f32 %v1936_v40, %v820_v58  ;;  %1614 = vmatprep.mubr.msk.bf16.mxu0 %vm702_vm1, %v978_v52 }
 0x1dc   : > { %v923_v61 = vmul.f32 0.01, %v829_v57  ;;  %1615 = vmatmul.mubr.msk.bf16.gmra.mrb[20].mxu0 %vm702_vm1, %v979_v49  ;;  %v954_v63 = vmax.f32 %v826_v50, %v922_v55 }
 0x1dd   : > { %v921_v62 = vmul.f32 0.01, %v821_v60  ;;  %v952_v1 = vmax.f32 %v818_v53, %v920_v59 }
 0x1de   : > { %v955_v0 = vmax.f32 %v829_v57, %v923_v61 }
 0x1df   : > { %v953_v2 = vmax.f32 %v821_v60, %v921_v62  ;;  %v1584_v3 = vpop.f32.mrb[28].mxu1 }
 0x1e0   : > { %v981_v4 = vpack.c.bf16 %v955_v0, %v954_v63  ;;  %v842_v5 = vadd.f32 %v1584_v3, %v1936_v40  ;;  %v833_v6 = vpop.f32.mrb[29].mxu1 }
 0x1e1   : > { %v980_v7 = vpack.c.bf16 %v953_v2, %v952_v1  ;;  %v834_v8 = vadd.f32 %v1936_v40, %v833_v6  ;;  %v1585_v9 = vpop.f32.mrb[30].mxu1 }
 0x1e2   : > { %v926_v10 = vmul.f32 0.01, %v842_v5  ;;  %v845_v11 = vadd.f32 %v1585_v9, %v1936_v40  ;;  %v836_v12 = vpop.f32.mrb[31].mxu1 }
 0x1e3   : > { %v924_v56 = vmul.f32 0.01, %v834_v8  ;;  %v837_v45 = vadd.f32 %v1936_v40, %v836_v12  ;;  %1618 = vmatprep.mubr.msk.bf16.mxu0 %vm702_vm1, %v980_v7 }
 0x1e4   : > { %v927_v13 = vmul.f32 0.01, %v845_v11  ;;  %1619 = vmatmul.mubr.msk.bf16.gmra.mrb[24].mxu0 %vm702_vm1, %v981_v4  ;;  %v958_v15 = vmax.f32 %v842_v5, %v926_v10 }
 0x1e5   : > { %v925_v14 = vmul.f32 0.01, %v837_v45  ;;  %v956_v17 = vmax.f32 %v834_v8, %v924_v56 }
 0x1e6   : > { %v959_v16 = vmax.f32 %v845_v11, %v927_v13 }
 0x1e7   : > { %v957_v18 = vmax.f32 %v837_v45, %v925_v14  ;;  %v1588_v19 = vpop.f32.mrb[32].mxu1 }
 0x1e8   : > { %v983_v20 = vpack.c.bf16 %v959_v16, %v958_v15  ;;  %v858_v21 = vadd.f32 %v1588_v19, %v1936_v40  ;;  %v849_v22 = vpop.f32.mrb[33].mxu1 }
 0x1e9   : > { %v982_v23 = vpack.c.bf16 %v957_v18, %v956_v17  ;;  %v850_v24 = vadd.f32 %v1936_v40, %v849_v22  ;;  %v1589_v25 = vpop.f32.mrb[34].mxu1 }
 0x1ea   : > { %v930_v26 = vmul.f32 0.01, %v858_v21  ;;  %v861_v27 = vadd.f32 %v1589_v25, %v1936_v40  ;;  %v852_v28 = vpop.f32.mrb[35].mxu1 }
 0x1eb   : > { %v928_v29 = vmul.f32 0.01, %v850_v24  ;;  %v853_v30 = vadd.f32 %v1936_v40, %v852_v28  ;;  %1622 = vmatprep.mubr.msk.bf16.mxu0 %vm702_vm1, %v982_v23 }
 0x1ec   : > { %v931_v31 = vmul.f32 0.01, %v861_v27  ;;  %1623 = vmatmul.mubr.msk.bf16.gmra.mrb[28].mxu0 %vm702_vm1, %v983_v20  ;;  %v962_v33 = vmax.f32 %v858_v21, %v930_v26 }
 0x1ed   : > { %v929_v32 = vmul.f32 0.01, %v853_v30  ;;  %v960_v35 = vmax.f32 %v850_v24, %v928_v29 }
 0x1ee   : > { %v963_v34 = vmax.f32 %v861_v27, %v931_v31 }
 0x1ef   : > { %v961_v36 = vmax.f32 %v853_v30, %v929_v32  ;;  %v1592_v37 = vpop.f32.mrb[36].mxu1 }
 0x1f0   : > { %v985_v38 = vpack.c.bf16 %v963_v34, %v962_v33  ;;  %v874_v39 = vadd.f32 %v1592_v37, %v1936_v40  ;;  %v865_v41 = vpop.f32.mrb[37].mxu1 }
 0x1f1   : > { %v984_v42 = vpack.c.bf16 %v961_v36, %v960_v35  ;;  %v866_v43 = vadd.f32 %v1936_v40, %v865_v41  ;;  %v1593_v44 = vpop.f32.mrb[38].mxu1 }
 0x1f2   : > { %v934_v46 = vmul.f32 0.01, %v874_v39  ;;  %v877_v47 = vadd.f32 %v1593_v44, %v1936_v40  ;;  %v868_v48 = vpop.f32.mrb[39].mxu1  ;;  %v2000_v44 = vld [vmem:[%s2141_s7] ss:$0 sm:$0xff] }
 0x1f3   : > { %v932_v49 = vmul.f32 0.01, %v866_v43  ;;  %v869_v50 = vadd.f32 %v1936_v40, %v868_v48  ;;  %1626 = vmatprep.mubr.msk.bf16.mxu0 %vm702_vm1, %v984_v42 }
 0x1f4   : > { %v935_v51 = vmul.f32 0.01, %v877_v47  ;;  %1627 = vmatmul.mubr.msk.bf16.gmra.mrb[32].mxu0 %vm702_vm1, %v985_v38  ;;  %v966_v53 = vmax.f32 %v874_v39, %v934_v46 }
 0x1f5   : > { %v933_v52 = vmul.f32 0.01, %v869_v50  ;;  %v964_v55 = vmax.f32 %v866_v43, %v932_v49 }
 0x1f6   : > { %v967_v54 = vmax.f32 %v877_v47, %v935_v51 }
 0x1f7   : > { %v965_v57 = vmax.f32 %v869_v50, %v933_v52  ;;  %v1596_v58 = vpop.f32.mrb[40].mxu1 }
 0x1f8   : > { %v987_v59 = vpack.c.bf16 %v967_v54, %v966_v53  ;;  %v890_v60 = vadd.f32 %v1596_v58, %v1936_v40  ;;  %v881_v61 = vpop.f32.mrb[41].mxu1 }
 0x1f9   : > { %v986_v62 = vpack.c.bf16 %v965_v57, %v964_v55  ;;  %v882_v63 = vadd.f32 %v1936_v40, %v881_v61  ;;  %v1597_v0 = vpop.f32.mrb[42].mxu1 }
 0x1fa   : > { %v938_v1 = vmul.f32 0.01, %v890_v60  ;;  %v893_v2 = vadd.f32 %v1597_v0, %v1936_v40  ;;  %v884_v3 = vpop.f32.mrb[43].mxu1 }
 0x1fb   : > { %v936_v4 = vmul.f32 0.01, %v882_v63  ;;  %v885_v5 = vadd.f32 %v1936_v40, %v884_v3  ;;  %1630 = vmatprep.mubr.msk.bf16.mxu0 %vm702_vm1, %v986_v62 }
 0x1fc   : > { %v939_v6 = vmul.f32 0.01, %v893_v2  ;;  %1631 = vmatmul.mubr.msk.bf16.gmra.mrb[36].mxu0 %vm702_vm1, %v987_v59  ;;  %v970_v8 = vmax.f32 %v890_v60, %v938_v1 }
 0x1fd   : > { %v937_v7 = vmul.f32 0.01, %v885_v5  ;;  %v968_v10 = vmax.f32 %v882_v63, %v936_v4 }
 0x1fe   : > { %v971_v9 = vmax.f32 %v893_v2, %v939_v6 }
 0x1ff   : > { %v969_v11 = vmax.f32 %v885_v5, %v937_v7  ;;  %v1600_v12 = vpop.f32.mrb[44].mxu1 }
 0x200   : > { %v989_v56 = vpack.c.bf16 %v971_v9, %v970_v8  ;;  %v906_v45 = vadd.f32 %v1600_v12, %v1936_v40  ;;  %v897_v13 = vpop.f32.mrb[45].mxu1 }
 0x201   : > { %v988_v14 = vpack.c.bf16 %v969_v11, %v968_v10  ;;  %v898_v15 = vadd.f32 %v1936_v40, %v897_v13  ;;  %v1601_v16 = vpop.f32.mrb[46].mxu1 }
 0x202   : > { %v942_v17 = vmul.f32 0.01, %v906_v45  ;;  %v909_v18 = vadd.f32 %v1601_v16, %v1936_v40  ;;  %v900_v19 = vpop.f32.mrb[47].mxu1 }
 0x203   : > { %v940_v20 = vmul.f32 0.01, %v898_v15  ;;  %v901_v21 = vadd.f32 %v1936_v40, %v900_v19  ;;  %1634 = vmatprep.mubr.msk.bf16.mxu0 %vm702_vm1, %v988_v14  ;;  %v1989_v40 = vld [vmem:[%s2140_s6] ss:$0 sm:$0xff] }
 0x204   : > { %v943_v22 = vmul.f32 0.01, %v909_v18  ;;  %1635 = vmatmul.mubr.msk.bf16.gmra.mrb[40].mxu0 %vm702_vm1, %v989_v56  ;;  %v974_v24 = vmax.f32 %v906_v45, %v942_v17 }
 0x205   : > { %v941_v23 = vmul.f32 0.01, %v901_v21  ;;  %v972_v26 = vmax.f32 %v898_v15, %v940_v20 }
 0x206   : > { %v975_v25 = vmax.f32 %v909_v18, %v943_v22 }
 0x207   : > { %v973_v27 = vmax.f32 %v901_v21, %v941_v23 }
 0x208   : > { %v991_v28 = vpack.c.bf16 %v975_v25, %v974_v24 }
 0x209   : > { %v990_v29 = vpack.c.bf16 %v973_v27, %v972_v26 }
 0x20b   : > { %1638 = vmatprep.mubr.msk.bf16.mxu0 %vm702_vm1, %v990_v29 }
 0x20c   : > { %1639 = vmatmul.mubr.msk.bf16.gmra.mrb[44].mxu0 %vm702_vm1, %v991_v28 }
 0x2a7   : > { %v1612_v30 = vpop.f32.mrb[16].mxu0 }
 0x2a8   : > { %v1122_v31 = vadd.f32 %v1612_v30, %v1989_v40  ;;  %v1113_v32 = vpop.f32.mrb[17].mxu0 }
 0x2a9   : > { %v1114_v33 = vadd.f32 %v1989_v40, %v1113_v32  ;;  %v1613_v34 = vpop.f32.mrb[18].mxu0 }
 0x2aa   : > { %1661 = vtanh.f32 %v1122_v31  ;;  %v1125_v35 = vadd.f32 %v1613_v34, %v1989_v40  ;;  %v1116_v36 = vpop.f32.mrb[19].mxu0 }
 0x2ab   : > { %1663 = vtanh.f32 %v1114_v33  ;;  %v1117_v37 = vadd.f32 %v1989_v40, %v1116_v36 }
 0x2ac   : > { %1665 = vtanh.f32 %v1125_v35 }
 0x2ad   : > { %1667 = vtanh.f32 %v1117_v37 }
 0x2af   : > { %v1616_v38 = vpop.f32.mrb[20].mxu0 }
 0x2b0   : > { %v1138_v39 = vadd.f32 %v1616_v38, %v1989_v40  ;;  %v1129_v41 = vpop.f32.mrb[21].mxu0 }
 0x2b1   : > { %v1130_v42 = vadd.f32 %v1989_v40, %v1129_v41  ;;  %v1617_v43 = vpop.f32.mrb[22].mxu0 }
 0x2b2   : > { %1669 = vtanh.f32 %v1138_v39  ;;  %v1141_v46 = vadd.f32 %v1617_v43, %v1989_v40  ;;  %v1132_v47 = vpop.f32.mrb[23].mxu0 }
 0x2b3   : > { %1671 = vtanh.f32 %v1130_v42  ;;  %v1133_v48 = vadd.f32 %v1989_v40, %v1132_v47 }
 0x2b4   : > { %v1662_v49 = vpop.eup %1661  ;;  %1673 = vtanh.f32 %v1141_v46 }
 0x2b5   : > { %v1664_v50 = vpop.eup %1663  ;;  %v1281_v51 = vmul.f32 %v1662_v49, %v2000_v44  ;;  %1675 = vtanh.f32 %v1133_v48 }
 0x2b6   : > { %v1666_v52 = vpop.eup %1665  ;;  %v1279_v53 = vmul.f32 %v1664_v50, %v2000_v44 }
 0x2b7   : > { %v1668_v54 = vpop.eup %1667  ;;  %1313 = vst.msk [vmem:[%s2009_s21 + $0x10] sm:$0xff] %vm373_vm0, %v1281_v51  ;;  %v1282_v55 = vmul.f32 %v1666_v52, %v2000_v44  ;;  %v1620_v57 = vpop.f32.mrb[24].mxu0 }
 0x2b8   : > { %1311 = vst.msk [vmem:[%s2009_s21] sm:$0xff] %vm373_vm0, %v1279_v53  ;;  %v1280_v58 = vmul.f32 %v1668_v54, %v2000_v44  ;;  %v1154_v59 = vadd.f32 %v1620_v57, %v1989_v40  ;;  %v1145_v60 = vpop.f32.mrb[25].mxu0 }
 0x2b9   : > { %1314 = vst.msk [vmem:[%s2009_s21 + $0x18] sm:$0xff] %vm373_vm0, %v1282_v55  ;;  %v1146_v61 = vadd.f32 %v1989_v40, %v1145_v60  ;;  %v1621_v62 = vpop.f32.mrb[26].mxu0 }
 0x2ba   : > { %1312 = vst.msk [vmem:[%s2009_s21 + $0x8] sm:$0xff] %vm373_vm0, %v1280_v58  ;;  %1677 = vtanh.f32 %v1154_v59  ;;  %v1157_v63 = vadd.f32 %v1621_v62, %v1989_v40  ;;  %v1148_v0 = vpop.f32.mrb[27].mxu0 }
 0x2bb   : > { %1679 = vtanh.f32 %v1146_v61  ;;  %v1149_v1 = vadd.f32 %v1989_v40, %v1148_v0 }
 0x2bc   : > { %v1670_v2 = vpop.eup %1669  ;;  %1681 = vtanh.f32 %v1157_v63 }
 0x2bd   : > { %v1672_v3 = vpop.eup %1671  ;;  %v1285_v4 = vmul.f32 %v1670_v2, %v2000_v44  ;;  %1683 = vtanh.f32 %v1149_v1 }
 0x2be   : > { %v1674_v5 = vpop.eup %1673  ;;  %v1283_v6 = vmul.f32 %v1672_v3, %v2000_v44 }
 0x2bf   : > { %v1676_v7 = vpop.eup %1675  ;;  %1317 = vst.msk [vmem:[%s2009_s21 + $0x30] sm:$0xff] %vm373_vm0, %v1285_v4  ;;  %v1286_v8 = vmul.f32 %v1674_v5, %v2000_v44  ;;  %v1624_v9 = vpop.f32.mrb[28].mxu0 }
 0x2c0   : > { %1315 = vst.msk [vmem:[%s2009_s21 + $0x20] sm:$0xff] %vm373_vm0, %v1283_v6  ;;  %v1284_v10 = vmul.f32 %v1676_v7, %v2000_v44  ;;  %v1170_v11 = vadd.f32 %v1624_v9, %v1989_v40  ;;  %v1161_v12 = vpop.f32.mrb[29].mxu0 }
 0x2c1   : > { %1318 = vst.msk [vmem:[%s2009_s21 + $0x38] sm:$0xff] %vm373_vm0, %v1286_v8  ;;  %v1162_v56 = vadd.f32 %v1989_v40, %v1161_v12  ;;  %v1625_v45 = vpop.f32.mrb[30].mxu0 }
 0x2c2   : > { %1316 = vst.msk [vmem:[%s2009_s21 + $0x28] sm:$0xff] %vm373_vm0, %v1284_v10  ;;  %1685 = vtanh.f32 %v1170_v11  ;;  %v1173_v13 = vadd.f32 %v1625_v45, %v1989_v40  ;;  %v1164_v14 = vpop.f32.mrb[31].mxu0 }
 0x2c3   : > { %1687 = vtanh.f32 %v1162_v56  ;;  %v1165_v15 = vadd.f32 %v1989_v40, %v1164_v14 }
 0x2c4   : > { %v1678_v16 = vpop.eup %1677  ;;  %1689 = vtanh.f32 %v1173_v13 }
 0x2c5   : > { %v1680_v17 = vpop.eup %1679  ;;  %v1289_v18 = vmul.f32 %v1678_v16, %v2000_v44  ;;  %1691 = vtanh.f32 %v1165_v15 }
 0x2c6   : > { %v1682_v19 = vpop.eup %1681  ;;  %v1287_v20 = vmul.f32 %v1680_v17, %v2000_v44 }
 0x2c7   : > { %v1684_v21 = vpop.eup %1683  ;;  %1321 = vst.msk [vmem:[%s2009_s21 + $0x50] sm:$0xff] %vm373_vm0, %v1289_v18  ;;  %v1290_v22 = vmul.f32 %v1682_v19, %v2000_v44  ;;  %v1628_v23 = vpop.f32.mrb[32].mxu0 }
 0x2c8   : > { %1319 = vst.msk [vmem:[%s2009_s21 + $0x40] sm:$0xff] %vm373_vm0, %v1287_v20  ;;  %v1288_v24 = vmul.f32 %v1684_v21, %v2000_v44  ;;  %v1186_v25 = vadd.f32 %v1628_v23, %v1989_v40  ;;  %v1177_v26 = vpop.f32.mrb[33].mxu0 }
 0x2c9   : > { %1322 = vst.msk [vmem:[%s2009_s21 + $0x58] sm:$0xff] %vm373_vm0, %v1290_v22  ;;  %v1178_v27 = vadd.f32 %v1989_v40, %v1177_v26  ;;  %v1629_v28 = vpop.f32.mrb[34].mxu0 }
 0x2ca   : > { %1320 = vst.msk [vmem:[%s2009_s21 + $0x48] sm:$0xff] %vm373_vm0, %v1288_v24  ;;  %1693 = vtanh.f32 %v1186_v25  ;;  %v1189_v29 = vadd.f32 %v1629_v28, %v1989_v40  ;;  %v1180_v30 = vpop.f32.mrb[35].mxu0 }
 0x2cb   : > { %1695 = vtanh.f32 %v1178_v27  ;;  %v1181_v31 = vadd.f32 %v1989_v40, %v1180_v30 }
 0x2cc   : > { %v1686_v32 = vpop.eup %1685  ;;  %1697 = vtanh.f32 %v1189_v29 }
 0x2cd   : > { %v1688_v33 = vpop.eup %1687  ;;  %v1293_v34 = vmul.f32 %v1686_v32, %v2000_v44  ;;  %1699 = vtanh.f32 %v1181_v31 }
 0x2ce   : > { %v1690_v35 = vpop.eup %1689  ;;  %v1291_v36 = vmul.f32 %v1688_v33, %v2000_v44 }
 0x2cf   : > { %v1692_v37 = vpop.eup %1691  ;;  %1325 = vst.msk [vmem:[%s2009_s21 + $0x70] sm:$0xff] %vm373_vm0, %v1293_v34  ;;  %v1294_v38 = vmul.f32 %v1690_v35, %v2000_v44  ;;  %v1632_v39 = vpop.f32.mrb[36].mxu0 }
 0x2d0   : > { %1323 = vst.msk [vmem:[%s2009_s21 + $0x60] sm:$0xff] %vm373_vm0, %v1291_v36  ;;  %v1292_v41 = vmul.f32 %v1692_v37, %v2000_v44  ;;  %v1202_v42 = vadd.f32 %v1632_v39, %v1989_v40  ;;  %v1193_v43 = vpop.f32.mrb[37].mxu0 }
 0x2d1   : > { %1326 = vst.msk [vmem:[%s2009_s21 + $0x78] sm:$0xff] %vm373_vm0, %v1294_v38  ;;  %v1194_v46 = vadd.f32 %v1989_v40, %v1193_v43  ;;  %v1633_v47 = vpop.f32.mrb[38].mxu0 }
 0x2d2   : > { %1324 = vst.msk [vmem:[%s2009_s21 + $0x68] sm:$0xff] %vm373_vm0, %v1292_v41  ;;  %1701 = vtanh.f32 %v1202_v42  ;;  %v1205_v48 = vadd.f32 %v1633_v47, %v1989_v40  ;;  %v1196_v49 = vpop.f32.mrb[39].mxu0 }
 0x2d3   : > { %1703 = vtanh.f32 %v1194_v46  ;;  %v1197_v50 = vadd.f32 %v1989_v40, %v1196_v49 }
 0x2d4   : > { %v1694_v51 = vpop.eup %1693  ;;  %1705 = vtanh.f32 %v1205_v48 }
 0x2d5   : > { %v1696_v52 = vpop.eup %1695  ;;  %v1297_v53 = vmul.f32 %v1694_v51, %v2000_v44  ;;  %1707 = vtanh.f32 %v1197_v50 }
 0x2d6   : > { %v1698_v54 = vpop.eup %1697  ;;  %v1295_v55 = vmul.f32 %v1696_v52, %v2000_v44 }
 0x2d7   : > { %v1700_v57 = vpop.eup %1699  ;;  %1329 = vst.msk [vmem:[%s2009_s21 + $0x90] sm:$0xff] %vm373_vm0, %v1297_v53  ;;  %v1298_v58 = vmul.f32 %v1698_v54, %v2000_v44  ;;  %v1636_v59 = vpop.f32.mrb[40].mxu0 }
 0x2d8   : > { %1327 = vst.msk [vmem:[%s2009_s21 + $0x80] sm:$0xff] %vm373_vm0, %v1295_v55  ;;  %v1296_v60 = vmul.f32 %v1700_v57, %v2000_v44  ;;  %v1218_v61 = vadd.f32 %v1636_v59, %v1989_v40  ;;  %v1209_v62 = vpop.f32.mrb[41].mxu0 }
 0x2d9   : > { %1330 = vst.msk [vmem:[%s2009_s21 + $0x98] sm:$0xff] %vm373_vm0, %v1298_v58  ;;  %v1210_v63 = vadd.f32 %v1989_v40, %v1209_v62  ;;  %v1637_v0 = vpop.f32.mrb[42].mxu0 }
 0x2da   : > { %1328 = vst.msk [vmem:[%s2009_s21 + $0x88] sm:$0xff] %vm373_vm0, %v1296_v60  ;;  %1709 = vtanh.f32 %v1218_v61  ;;  %v1221_v1 = vadd.f32 %v1637_v0, %v1989_v40  ;;  %v1212_v2 = vpop.f32.mrb[43].mxu0 }
 0x2db   : > { %1711 = vtanh.f32 %v1210_v63  ;;  %v1213_v3 = vadd.f32 %v1989_v40, %v1212_v2 }
 0x2dc   : > { %v1702_v4 = vpop.eup %1701  ;;  %1713 = vtanh.f32 %v1221_v1 }
 0x2dd   : > { %v1704_v5 = vpop.eup %1703  ;;  %v1301_v6 = vmul.f32 %v1702_v4, %v2000_v44  ;;  %1715 = vtanh.f32 %v1213_v3 }
 0x2de   : > { %v1706_v7 = vpop.eup %1705  ;;  %v1299_v8 = vmul.f32 %v1704_v5, %v2000_v44 }
 0x2df   : > { %v1708_v9 = vpop.eup %1707  ;;  %1333 = vst.msk [vmem:[%s2009_s21 + $0xb0] sm:$0xff] %vm373_vm0, %v1301_v6  ;;  %v1302_v10 = vmul.f32 %v1706_v7, %v2000_v44  ;;  %v1640_v11 = vpop.f32.mrb[44].mxu0 }
 0x2e0   : > { %1331 = vst.msk [vmem:[%s2009_s21 + $0xa0] sm:$0xff] %vm373_vm0, %v1299_v8  ;;  %v1300_v12 = vmul.f32 %v1708_v9, %v2000_v44  ;;  %v1234_v56 = vadd.f32 %v1640_v11, %v1989_v40  ;;  %v1225_v45 = vpop.f32.mrb[45].mxu0 }
 0x2e1   : > { %1334 = vst.msk [vmem:[%s2009_s21 + $0xb8] sm:$0xff] %vm373_vm0, %v1302_v10  ;;  %v1226_v13 = vadd.f32 %v1989_v40, %v1225_v45  ;;  %v1641_v14 = vpop.f32.mrb[46].mxu0 }
 0x2e2   : > { %1332 = vst.msk [vmem:[%s2009_s21 + $0xa8] sm:$0xff] %vm373_vm0, %v1300_v12  ;;  %1717 = vtanh.f32 %v1234_v56  ;;  %v1237_v15 = vadd.f32 %v1641_v14, %v1989_v40  ;;  %v1228_v16 = vpop.f32.mrb[47].mxu0 }
 0x2e3   : > { %1719 = vtanh.f32 %v1226_v13  ;;  %v1229_v17 = vadd.f32 %v1989_v40, %v1228_v16 }
 0x2e4   : > { %v1710_v18 = vpop.eup %1709  ;;  %1721 = vtanh.f32 %v1237_v15 }
 0x2e5   : > { %v1712_v19 = vpop.eup %1711  ;;  %v1305_v20 = vmul.f32 %v1710_v18, %v2000_v44  ;;  %1723 = vtanh.f32 %v1229_v17 }
 0x2e6   : > { %v1714_v21 = vpop.eup %1713  ;;  %v1303_v22 = vmul.f32 %v1712_v19, %v2000_v44 }
 0x2e7   : > { %v1716_v23 = vpop.eup %1715  ;;  %1337 = vst.msk [vmem:[%s2009_s21 + $0xd0] sm:$0xff] %vm373_vm0, %v1305_v20  ;;  %v1306_v24 = vmul.f32 %v1714_v21, %v2000_v44 }
 0x2e8   : > { %1335 = vst.msk [vmem:[%s2009_s21 + $0xc0] sm:$0xff] %vm373_vm0, %v1303_v22  ;;  %v1304_v40 = vmul.f32 %v1716_v23, %v2000_v44 }
 0x2e9   : > { %1338 = vst.msk [vmem:[%s2009_s21 + $0xd8] sm:$0xff] %vm373_vm0, %v1306_v24 }
 0x2ea   : > { %1336 = vst.msk [vmem:[%s2009_s21 + $0xc8] sm:$0xff] %vm373_vm0, %v1304_v40 }
 0x2ec   : > { %v1718_v25 = vpop.eup %1717 }
 0x2ed   : > { %v1720_v26 = vpop.eup %1719  ;;  %v1309_v27 = vmul.f32 %v1718_v25, %v2000_v44 }
 0x2ee   : > { %v1722_v28 = vpop.eup %1721  ;;  %v1307_v29 = vmul.f32 %v1720_v26, %v2000_v44 }
 0x2ef   : > { %v1724_v30 = vpop.eup %1723  ;;  %1341 = vst.msk [vmem:[%s2009_s21 + $0xf0] sm:$0xff] %vm373_vm0, %v1309_v27  ;;  %v1310_v31 = vmul.f32 %v1722_v28, %v2000_v44 }
 0x2f0   : > { %1339 = vst.msk [vmem:[%s2009_s21 + $0xe0] sm:$0xff] %vm373_vm0, %v1307_v29  ;;  %v1308_v32 = vmul.f32 %v1724_v30, %v2000_v44 }
 0x2f1   : > { %1342 = vst.msk [vmem:[%s2009_s21 + $0xf8] sm:$0xff] %vm373_vm0, %v1310_v31 }
 0x2f2   : > { %1340 = vst.msk [vmem:[%s2009_s21 + $0xe8] sm:$0xff] %vm373_vm0, %v1308_v32 }
 0x2f3 PF: > { %s18_s27 = sadd.s32 1, %s1731_s27  }
 0x2f4   : > { %p15_p4 = scmp.ge.s32.totalorder %s18_s27, 4  }
 0x2f6   :  { %17 = sbr.rel (!%p15_p4) target bundleno = 1 (0x1), region = 82 }

</bundles_post_ra>
